<compile_context>
chip_gen: v5e
topology: v5e:2x2
jax: 0.10.0
libtpu: 0.0.40
codegen_flags: <defaults>
</compile_context>

<pallas_src>
import functools
import math

import jax
import jax.numpy as jnp
from jax.experimental import pallas as pl
from jax.experimental.pallas import tpu as pltpu

LOG_STD_MAX = 2.0
LOG_STD_MIN = -5.0

# ----------------------- model configuration (small, synthetic) --------------
BATCH = 4
OBS_DIM = 16          # env.single_observation_space.shape -> prod = 16
ACT_DIM = 4           # env.single_action_space.shape      -> prod = 4
HIDDEN_DIM = 32       # args.actor_hidden_dim
N_HIDDEN_LAYERS = 2   # args.N_hidden_layers
ADD_LAST_ACTION = False
ADD_LAST_REWARD = False
INPUT_DIM = OBS_DIM + (ACT_DIM if ADD_LAST_ACTION else 0) + (1 if ADD_LAST_REWARD else 0)

N_BLOCKS = 1 + N_HIDDEN_LAYERS
SKIP_DIM = INPUT_DIM + N_BLOCKS * HIDDEN_DIM            # head input dim (skip concat)
HEAD_PAD = max(128, ((2 * ACT_DIM + 127) // 128) * 128)  # lane-dense fused-head width
FUSED_W = HEAD_PAD + HIDDEN_DIM                          # fused [head | trunk] width
OUT_W = 2 * ACT_DIM                                      # narrow HBM output width


def _round_up(x, m):
    return ((x + m - 1) // m) * m


def _num_tensorcores():
    """Best-effort TensorCores per chip: v7x -> 2, v5e/v6e -> 1 (safe fallback 1)."""
    try:
        kind = jax.devices()[0].device_kind.lower()
    except Exception:
        return 1
    if "v7" in kind or "7x" in kind:
        return 2
    return 1


# ------------------------------- kernel --------------------------------------
def actor_skip_kernel(n_blocks, act_dim, head_pad, row_offs,
                      x_ref, w_ref, b_ref, out_ref):
    """x_ref:   (tb, INPUT_DIM) f32
       w_ref:   (SKIP_DIM, FUSED_W) resident fused-weight slab
       b_ref:   (N_BLOCKS, FUSED_W) f32 resident bias slab
       out_ref: (tb, 2*ACT_DIM) f32  -- cols [0,A)=mean, [A,2A)=log_std
    """
    h = x_ref[...]                                          # (tb, INPUT_DIM) f32
    acc = None
    for i in range(n_blocks):
        # Fused per-activation weight: cols [0:head_pad)=head, [head_pad:)=trunk.
        w = w_ref[row_offs[i]:row_offs[i + 1], :]           # static, tile-aligned slice
        z = jnp.dot(h.astype(w.dtype), w, preferred_element_type=jnp.float32)
        if i == 0:
            z = z + b_ref[0:1, :]                           # [b_head | b_0]
            acc = z[:, :head_pad]
            h = jnp.maximum(z[:, head_pad:], 0.0)
        else:
            # Single accumulation chain -> MRB in-place accumulate on v7x.
            acc = acc + z[:, :head_pad]
            h = jnp.maximum(z[:, head_pad:] + b_ref[i:i + 1, head_pad:], 0.0)

    # Last hidden activation feeds the head only.
    w_last = w_ref[row_offs[n_blocks]:row_offs[n_blocks + 1], :head_pad]
    acc = acc + jnp.dot(h.astype(w_last.dtype), w_last,
                        preferred_element_type=jnp.float32)

    # Narrow to the live lanes, squash only the log_std columns, store narrow.
    y = acc[:, :2 * act_dim]                                # (tb, 2*ACT_DIM)
    col = jax.lax.broadcasted_iota(jnp.int32, y.shape, 1)
    squashed = LOG_STD_MIN + 0.5 * (LOG_STD_MAX - LOG_STD_MIN) * (jnp.tanh(y) + 1.0)
    out_ref[...] = jnp.where(col >= act_dim, squashed, y).astype(out_ref.dtype)


# --------------------------- host-side packing --------------------------------
def pack_params(params, use_bf16=False):
    """Build the two resident slabs:
         W_slab (SKIP_DIM, FUSED_W): per-activation [Wh_i | W_i] row blocks
                                     (last block's trunk part is zero / unused).
         B_slab (N_BLOCKS, FUSED_W): row 0 = [b_head | b_0], row i>0 = [0 | b_i]; f32.
    """
    w_dtype = jnp.bfloat16 if use_bf16 else jnp.float32

    wm, bm = params["mean"]
    ws, bs = params["logstd"]
    w_head = jnp.concatenate([wm, ws], axis=1)                      # (SKIP_DIM, 2A)
    w_head = jnp.pad(w_head, ((0, 0), (0, HEAD_PAD - 2 * ACT_DIM)))  # (SKIP_DIM, HEAD_PAD)
    b_head = jnp.concatenate([bm, bs], axis=1)
    b_head = jnp.pad(b_head, ((0, 0), (0, HEAD_PAD - 2 * ACT_DIM)))  # (1, HEAD_PAD)

    seg_dims = [INPUT_DIM] + [HIDDEN_DIM] * N_BLOCKS
    row_offs = [0]
    for d in seg_dims:
        row_offs.append(row_offs[-1] + d)

    trunk_ws = [w for (w, _) in params["trunk"]]
    trunk_bs = [b for (_, b) in params["trunk"]]

    blocks = []
    for i in range(N_BLOCKS + 1):
        head_seg = w_head[row_offs[i]:row_offs[i + 1]]              # (seg, HEAD_PAD)
        if i < N_BLOCKS:
            trunk_seg = trunk_ws[i]                                 # (seg, HIDDEN_DIM)
        else:
            trunk_seg = jnp.zeros((seg_dims[i], HIDDEN_DIM), jnp.float32)
        blocks.append(jnp.concatenate([head_seg, trunk_seg], axis=1))
    w_slab = jnp.concatenate(blocks, axis=0).astype(w_dtype)        # (SKIP_DIM, FUSED_W)

    b_rows = []
    for i in range(N_BLOCKS):
        head_part = b_head if i == 0 else jnp.zeros((1, HEAD_PAD), jnp.float32)
        b_rows.append(jnp.concatenate([head_part, trunk_bs[i]], axis=1))
    b_slab = jnp.concatenate(b_rows, axis=0).astype(jnp.float32)    # (N_BLOCKS, FUSED_W)

    return w_slab, b_slab, tuple(row_offs)


def actor_skip_forward(x, params, *, use_bf16=False, max_tile_b=2048, num_cores=None):
    """x: (B, INPUT_DIM) f32. Returns (mean, log_std), each (B, ACT_DIM) f32."""
    b = x.shape[0]
    w_slab, b_slab, row_offs = pack_params(params, use_bf16=use_bf16)

    # Generation-aware grid: one step per TensorCore (1 on v5e/v6e, 2 on v7x),
    # capped by max_tile_b (VMEM footprint stays far below every generation's limit).
    if num_cores is None:
        num_cores = _num_tensorcores()
    tb = _round_up(-(-b // max(1, num_cores)), 8)
    tb = max(8, min(tb, _round_up(max_tile_b, 8)))
    b_pad = _round_up(b, tb)
    if b_pad != b:
        x = jnp.pad(x, ((0, b_pad - b), (0, 0)))
    grid = (b_pad // tb,)

    kernel = functools.partial(actor_skip_kernel, N_BLOCKS, ACT_DIM, HEAD_PAD, row_offs)
    out = pl.pallas_call(
        kernel,
        grid=grid,
        in_specs=[
            pl.BlockSpec((tb, INPUT_DIM), lambda i: (i, 0)),     # batch-tiled input
            pl.BlockSpec(w_slab.shape, lambda i: (0, 0)),        # resident weight slab
            pl.BlockSpec(b_slab.shape, lambda i: (0, 0)),        # resident bias slab
        ],
        out_specs=pl.BlockSpec((tb, OUT_W), lambda i: (i, 0)),
        out_shape=jax.ShapeDtypeStruct((b_pad, OUT_W), jnp.float32),
        compiler_params=pltpu.CompilerParams(
            dimension_semantics=("parallel",),
        ),
    )(x, w_slab, b_slab)

    mean = out[:b, :ACT_DIM]
    log_std = out[:b, ACT_DIM:2 * ACT_DIM]
    return mean, log_std


# -------------------------- deterministic init --------------------------------
def init_linear(key, in_dim, out_dim):
    """PyTorch nn.Linear default init: U(-1/sqrt(in_dim), 1/sqrt(in_dim)).
    Weight stored pre-transposed as (in_dim, out_dim), bias (1, out_dim)."""
    kw, kb = jax.random.split(key)
    bound = 1.0 / math.sqrt(in_dim)
    w = jax.random.uniform(kw, (in_dim, out_dim), jnp.float32, -bound, bound)
    b = jax.random.uniform(kb, (1, out_dim), jnp.float32, -bound, bound)
    return w, b


def make_params(key):
    dims = [INPUT_DIM] + [HIDDEN_DIM] * N_BLOCKS
    keys = jax.random.split(key, N_BLOCKS + 2)
    trunk = []
    for i in range(N_BLOCKS):
        trunk.append(init_linear(keys[i], dims[i], dims[i + 1]))
    mean_head = init_linear(keys[-2], SKIP_DIM, ACT_DIM)
    logstd_head = init_linear(keys[-1], SKIP_DIM, ACT_DIM)
    return {"trunk": trunk, "mean": mean_head, "logstd": logstd_head}


# ------------------------------ pure-JAX reference -----------------------------
def actor_skip_ref(x, params):
    h = x
    acts = []
    for w, b in params["trunk"]:
        h = jnp.maximum(h @ w + b, 0.0)
        acts.append(h)
    last_hidden = jnp.concatenate([x] + acts, axis=1)
    wm, bm = params["mean"]
    ws, bs = params["logstd"]
    mean = last_hidden @ wm + bm
    log_std = jnp.tanh(last_hidden @ ws + bs)
    log_std = LOG_STD_MIN + 0.5 * (LOG_STD_MAX - LOG_STD_MIN) * (log_std + 1.0)
    return mean, log_std


if __name__ == "__main__":
    key = jax.random.PRNGKey(0)
    kx, kp = jax.random.split(key)
    x = jax.random.normal(kx, (BATCH, INPUT_DIM), jnp.float32)
    params = make_params(kp)

    # exact f32 path (small batch)
    mean, log_std = actor_skip_forward(x, params, use_bf16=False)
    jax.block_until_ready((mean, log_std))
    mean_ref, log_std_ref = actor_skip_ref(x, params)
    assert mean.shape == (BATCH, ACT_DIM) and log_std.shape == (BATCH, ACT_DIM)
    assert jnp.allclose(mean, mean_ref, atol=1e-5, rtol=1e-5)
    assert jnp.allclose(log_std, log_std_ref, atol=1e-5, rtol=1e-5)
    assert jnp.all(log_std >= LOG_STD_MIN) and jnp.all(log_std <= LOG_STD_MAX)

    # batched throughput configuration: per-core grid steps, bf16 matmul operands
    # (f32 accumulation).  On v5e prefer use_bf16=False (no bf16 VPU for the casts).
    xb = jax.random.normal(jax.random.fold_in(key, 1), (512, INPUT_DIM), jnp.float32)
    mean_b, log_std_b = actor_skip_forward(xb, params, use_bf16=True)
    jax.block_until_ready((mean_b, log_std_b))
    mean_b_ref, log_std_b_ref = actor_skip_ref(xb, params)
    assert jnp.allclose(mean_b, mean_b_ref, atol=5e-2, rtol=5e-2)
    assert jnp.allclose(log_std_b, log_std_b_ref, atol=5e-2, rtol=5e-2)
    assert jnp.all(log_std_b >= LOG_STD_MIN) and jnp.all(log_std_b <= LOG_STD_MAX)

    print("KERNEL_OK")
</pallas_src>

<mosaic_0001>
module attributes {stable_mosaic.version = 11 : i64} {
  func.func @actor_skip_kernel(%arg0: i32, %arg1: memref<8x16xf32, #tpu.memory_space<vmem>>, %arg2: memref<112x160xf32, #tpu.memory_space<vmem>>, %arg3: memref<3x160xf32, #tpu.memory_space<vmem>>, %arg4: memref<8x8xf32, #tpu.memory_space<vmem>>) attributes {dimension_semantics = [#tpu.dimension_semantics<parallel>], iteration_bounds = array<i64: 1>, scalar_prefetch = 0 : i64, scratch_operands = 0 : i64, tpu.core_type = #tpu.core_type<tc>, window_params = [{transform_indices = @transform_0, window_bounds = array<i64: 8, 16>}, {pipeline_mode = #tpu.pipeline_mode<synchronous>, transform_indices = @transform_1, window_bounds = array<i64: 112, 160>}, {pipeline_mode = #tpu.pipeline_mode<synchronous>, transform_indices = @transform_2, window_bounds = array<i64: 3, 160>}, {transform_indices = @transform_3, window_bounds = array<i64: 8, 8>}]} {
    %c0 = arith.constant 0 : index
    %c0_0 = arith.constant 0 : index
    %0 = vector.load %arg1[%c0, %c0_0] : memref<8x16xf32, #tpu.memory_space<vmem>>, vector<8x16xf32>
    %c0_1 = arith.constant 0 : index
    %c0_2 = arith.constant 0 : index
    %1 = vector.load %arg2[%c0_1, %c0_2] : memref<112x160xf32, #tpu.memory_space<vmem>>, vector<16x160xf32>
    %cst = arith.constant dense<0.000000e+00> : vector<8x160xf32>
    %2 = tpu.matmul %0, %1, %cst {dimension_numbers = #tpu.dot_dimension_numbers<[1], [0], [0], [1], [0, 0, 1, 1], [], []>} : vector<8x16xf32>, vector<16x160xf32>, vector<8x160xf32> -> vector<8x160xf32>
    %c0_3 = arith.constant 0 : index
    %c0_4 = arith.constant 0 : index
    %3 = vector.load %arg3[%c0_3, %c0_4] : memref<3x160xf32, #tpu.memory_space<vmem>>, vector<1x160xf32>
    %4 = vector.broadcast %3 : vector<1x160xf32> to vector<8x160xf32>
    %5 = arith.addf %2, %4 : vector<8x160xf32>
    %6 = vector.extract_strided_slice %5 {offsets = [0, 0], sizes = [8, 128], strides = [1, 1]} : vector<8x160xf32> to vector<8x128xf32>
    %7 = vector.extract_strided_slice %5 {offsets = [0, 128], sizes = [8, 32], strides = [1, 1]} : vector<8x160xf32> to vector<8x32xf32>
    %cst_5 = arith.constant 0.000000e+00 : f32
    %8 = vector.broadcast %cst_5 : f32 to vector<8x32xf32>
    %9 = arith.maximumf %7, %8 : vector<8x32xf32>
    %c16 = arith.constant 16 : index
    %c0_6 = arith.constant 0 : index
    %10 = vector.load %arg2[%c16, %c0_6] : memref<112x160xf32, #tpu.memory_space<vmem>>, vector<32x160xf32>
    %cst_7 = arith.constant dense<0.000000e+00> : vector<8x160xf32>
    %11 = tpu.matmul %9, %10, %cst_7 {dimension_numbers = #tpu.dot_dimension_numbers<[1], [0], [0], [1], [0, 0, 1, 1], [], []>} : vector<8x32xf32>, vector<32x160xf32>, vector<8x160xf32> -> vector<8x160xf32>
    %12 = vector.extract_strided_slice %11 {offsets = [0, 0], sizes = [8, 128], strides = [1, 1]} : vector<8x160xf32> to vector<8x128xf32>
    %13 = arith.addf %6, %12 : vector<8x128xf32>
    %14 = vector.extract_strided_slice %11 {offsets = [0, 128], sizes = [8, 32], strides = [1, 1]} : vector<8x160xf32> to vector<8x32xf32>
    %c1 = arith.constant 1 : index
    %c128 = arith.constant 128 : index
    %15 = vector.load %arg3[%c1, %c128] : memref<3x160xf32, #tpu.memory_space<vmem>>, vector<1x32xf32>
    %16 = vector.broadcast %15 : vector<1x32xf32> to vector<8x32xf32>
    %17 = arith.addf %14, %16 : vector<8x32xf32>
    %cst_8 = arith.constant 0.000000e+00 : f32
    %18 = vector.broadcast %cst_8 : f32 to vector<8x32xf32>
    %19 = arith.maximumf %17, %18 : vector<8x32xf32>
    %c48 = arith.constant 48 : index
    %c0_9 = arith.constant 0 : index
    %20 = vector.load %arg2[%c48, %c0_9] : memref<112x160xf32, #tpu.memory_space<vmem>>, vector<32x160xf32>
    %cst_10 = arith.constant dense<0.000000e+00> : vector<8x160xf32>
    %21 = tpu.matmul %19, %20, %cst_10 {dimension_numbers = #tpu.dot_dimension_numbers<[1], [0], [0], [1], [0, 0, 1, 1], [], []>} : vector<8x32xf32>, vector<32x160xf32>, vector<8x160xf32> -> vector<8x160xf32>
    %22 = vector.extract_strided_slice %21 {offsets = [0, 0], sizes = [8, 128], strides = [1, 1]} : vector<8x160xf32> to vector<8x128xf32>
    %23 = arith.addf %13, %22 : vector<8x128xf32>
    %24 = vector.extract_strided_slice %21 {offsets = [0, 128], sizes = [8, 32], strides = [1, 1]} : vector<8x160xf32> to vector<8x32xf32>
    %c2 = arith.constant 2 : index
    %c128_11 = arith.constant 128 : index
    %25 = vector.load %arg3[%c2, %c128_11] : memref<3x160xf32, #tpu.memory_space<vmem>>, vector<1x32xf32>
    %26 = vector.broadcast %25 : vector<1x32xf32> to vector<8x32xf32>
    %27 = arith.addf %24, %26 : vector<8x32xf32>
    %cst_12 = arith.constant 0.000000e+00 : f32
    %28 = vector.broadcast %cst_12 : f32 to vector<8x32xf32>
    %29 = arith.maximumf %27, %28 : vector<8x32xf32>
    %c80 = arith.constant 80 : index
    %c0_13 = arith.constant 0 : index
    %30 = vector.load %arg2[%c80, %c0_13] : memref<112x160xf32, #tpu.memory_space<vmem>>, vector<32x128xf32>
    %cst_14 = arith.constant dense<0.000000e+00> : vector<8x128xf32>
    %31 = tpu.matmul %29, %30, %cst_14 {dimension_numbers = #tpu.dot_dimension_numbers<[1], [0], [0], [1], [0, 0, 1, 1], [], []>} : vector<8x32xf32>, vector<32x128xf32>, vector<8x128xf32> -> vector<8x128xf32>
    %32 = arith.addf %23, %31 : vector<8x128xf32>
    %33 = vector.extract_strided_slice %32 {offsets = [0, 0], sizes = [8, 8], strides = [1, 1]} : vector<8x128xf32> to vector<8x8xf32>
    %34 = tpu.iota {dimensions = array<i32: 1>} : vector<8x8xi32>
    %35 = math.tanh %33 : vector<8x8xf32>
    %cst_15 = arith.constant 1.000000e+00 : f32
    %36 = vector.broadcast %cst_15 : f32 to vector<8x8xf32>
    %37 = arith.addf %35, %36 : vector<8x8xf32>
    %cst_16 = arith.constant 3.500000e+00 : f32
    %38 = vector.broadcast %cst_16 : f32 to vector<8x8xf32>
    %39 = arith.mulf %38, %37 : vector<8x8xf32>
    %cst_17 = arith.constant -5.000000e+00 : f32
    %40 = vector.broadcast %cst_17 : f32 to vector<8x8xf32>
    %41 = arith.addf %40, %39 : vector<8x8xf32>
    %c4_i32 = arith.constant 4 : i32
    %42 = vector.broadcast %c4_i32 : i32 to vector<8x8xi32>
    %43 = arith.cmpi sge, %34, %42 : vector<8x8xi32>
    %44 = arith.select %43, %41, %33 : vector<8x8xi1>, vector<8x8xf32>
    %c0_18 = arith.constant 0 : index
    %c0_19 = arith.constant 0 : index
    %45 = vector.load %arg4[%c0_18, %c0_19] : memref<8x8xf32, #tpu.memory_space<vmem>>, vector<8x8xf32>
    tpu.vector_store %arg4[%c0_18, %c0_19], %44 {strides = array<i32>} : memref<8x8xf32, #tpu.memory_space<vmem>>, vector<8x8xf32>,
    return
  }
  func.func @transform_0(%arg0: i32) -> (i32, i32) {
    %c0_i32 = arith.constant 0 : i32
    %c0_i32_0 = arith.constant 0 : i32
    return %arg0, %c0_i32 : i32, i32
  }
  func.func @transform_1(%arg0: i32) -> (i32, i32) {
    %c0_i32 = arith.constant 0 : i32
    %c0_i32_0 = arith.constant 0 : i32
    %c0_i32_1 = arith.constant 0 : i32
    return %c0_i32, %c0_i32_0 : i32, i32
  }
  func.func @transform_2(%arg0: i32) -> (i32, i32) {
    %c0_i32 = arith.constant 0 : i32
    %c0_i32_0 = arith.constant 0 : i32
    %c0_i32_1 = arith.constant 0 : i32
    return %c0_i32, %c0_i32_0 : i32, i32
  }
  func.func @transform_3(%arg0: i32) -> (i32, i32) {
    %c0_i32 = arith.constant 0 : i32
    %c0_i32_0 = arith.constant 0 : i32
    return %arg0, %c0_i32 : i32, i32
  }
}

</mosaic_0001>

<bundles_post_ra>
// kernel: tpu_custom_call.1
= control target key start
LH: loop header
LB: loop body
LE: loop exit
PB: predicated region body
PF: predicated region fallthrough
CT: control target
= control target key end

     0   :  { %vm26_vm0 = vcmask 130048   ;;  %s391_s0 = inlined_call_operand.vmem [shape: f32[8,16], index: 0, kind: input, shape index: {}]   ;;  %s392_s1 = inlined_call_operand.vmem [shape: f32[112,160], index: 1, kind: input, shape index: {}]   ;;  %s393_s2 = inlined_call_operand.vmem [shape: f32[3,160], index: 2, kind: input, shape index: {}]   ;;  %s394_s3 = inlined_call_operand.hbm [shape: f32[8,8], index: 3, kind: output, shape index: {}]  }
   0x1   :  { %v19_v0 = vld [vmem:[%s392_s1 + $0x18] sm:$0xff]  ;;  %v17_v1 = vld [vmem:[%s392_s1 + $0x8] sm:$0xff]  ;;  %v15_v2 = vld [vmem:[%s391_s0] sm:$0xff] }
   0x2   :  { %64 = vmatpush.msra.mxu1 %v19_v0  ;;  %v77_v3 = vld [vmem:[%s392_s1 + $0x50] sm:$0xff]  ;;  %v78_v4 = vld [vmem:[%s392_s1 + $0x58] sm:$0xff] }
   0x3   :  { %95 = vmatpush.msra.mxu2 %v77_v3  ;;  %115 = vmatpush.msra.mxu3 %v78_v4 }
   0x4   :  { %65 = vmatpush.msra.mxu1 %v17_v1 }
   0x5   :  { %8 = vsyncpa [#allocation3], 0  ;;  %239 = vmatmul.msk.f32.vlgmr.msra.gmra.mxu1 %vm26_vm0, %v15_v2  ;;  %v75_v5 = vld [vmem:[%s392_s1 + $0x40] sm:$0xff]  ;;  %v76_v6 = vld [vmem:[%s392_s1 + $0x48] sm:$0xff]  ;;  %vm79_vm1 = vcmask 261120   ;;  %v212_v47 = vlaneseq  ;;  %s229_s14 = sshll.u32 %s394_s3, 4  ;;  %s230_s14 = int_to_ptr.hbm [resolvable:$true] %s229_s14 }
   0x6   :  { %96 = vmatpush.msra.mxu2 %v75_v5  ;;  %116 = vmatpush.msra.mxu3 %v76_v6  ;;  %v73_v7 = vld [vmem:[%s392_s1 + $0x30] sm:$0xff]  ;;  %v74_v8 = vld [vmem:[%s392_s1 + $0x38] sm:$0xff]  ;;  %v71_v9 = vld [vmem:[%s392_s1 + $0x20] sm:$0xff]  ;;  %vm220_vm3 = vcmask 64512  }
   0x7   :  { %v72_v10 = vld [vmem:[%s392_s1 + $0x28] sm:$0xff]  ;;  %v18_v11 = vld [vmem:[%s392_s1 + $0x10] sm:$0xff]  ;;  %v16_v12 = vld [vmem:[%s392_s1] sm:$0xff]  ;;  %v213_v49 = vand.u32 127, %v212_v47 }
   0x8   :  { %97 = vmatpush.msra.mxu2 %v73_v7  ;;  %117 = vmatpush.msra.mxu3 %v74_v8  ;;  %v135_v13 = vld [vmem:[%s392_s1 + $0x98] sm:$0xff]  ;;  %v20_v14 = vld [vmem:[%s393_s2] ss:$4 sm:$0x3]  ;;  %v134_v19 = vld [vmem:[%s392_s1 + $0x90] sm:$0xff] }
   0x9   :  { %44 = vmatpush.msra.mxu0 %v18_v11  ;;  %171 = vmatpush.msrb.mxu1 %v135_v13  ;;  %v23_v15 = vperm.slane %v20_v14, 1  ;;  %v133_v20 = vld [vmem:[%s392_s1 + $0x88] sm:$0xff]  ;;  %v132_v21 = vld [vmem:[%s392_s1 + $0x80] sm:$0xff]  ;;  %v131_v22 = vld [vmem:[%s392_s1 + $0x78] sm:$0xff]  ;;  %v22_v39 = vperm.slane %v20_v14, 0  ;;  %vm218_vm2 = vcmp.ge.s32.totalorder %v213_v49, 4 }
   0xa   :  { %98 = vmatpush.msra.mxu2 %v71_v9  ;;  %118 = vmatpush.msra.mxu3 %v72_v10  ;;  %v130_v23 = vld [vmem:[%s392_s1 + $0x70] sm:$0xff]  ;;  %v129_v24 = vld [vmem:[%s392_s1 + $0x68] sm:$0xff]  ;;  %v128_v25 = vld [vmem:[%s392_s1 + $0x60] sm:$0xff] }
   0xb   :  { %45 = vmatpush.msra.mxu0 %v16_v12  ;;  %172 = vmatpush.msrb.mxu1 %v133_v20  ;;  %v187_v26 = vld [vmem:[%s392_s1 + $0xd0] sm:$0xff]  ;;  %v186_v27 = vld [vmem:[%s392_s1 + $0xc0] sm:$0xff] }
   0xc   :  { %238 = vmatmul.msk.f32.vlgmr.msra.gmra.mxu0 %vm26_vm0, %v15_v2  ;;  %203 = vmatpush.msrb.mxu2 %v187_v26  ;;  %v246_v28 = vld [vmem:[%s393_s2 + $0x5] ss:$0 sm:$0xff]  ;;  %v185_v32 = vld [vmem:[%s392_s1 + $0xb0] sm:$0xff]  ;;  %v247_v34 = vld [vmem:[%s393_s2 + $0x6] ss:$0 sm:$0xff] }
   0xd   :  { %151 = vmatpush.msrb.mxu0 %v134_v19  ;;  %173 = vmatpush.msrb.mxu1 %v131_v22  ;;  %v184_v33 = vld [vmem:[%s392_s1 + $0xa0] sm:$0xff]  ;;  %s276_s1 = smov [#allocation2]  }
   0xe   :  { %204 = vmatpush.msrb.mxu2 %v186_v27  ;;  %s227_s2 = sshll.u32 %s276_s1, 4  ;;  %s228_s2 = int_to_ptr.vmem [resolvable:$true] %s227_s2 }
   0xf   :  { %152 = vmatpush.msrb.mxu0 %v132_v21  ;;  %174 = vmatpush.msrb.mxu1 %v129_v24 }
  0x10   :  { %205 = vmatpush.msrb.mxu2 %v185_v32 }
  0x11   :  { %153 = vmatpush.msrb.mxu0 %v130_v23 }
  0x12   :  { %206 = vmatpush.msrb.mxu2 %v184_v33 }
  0x13   :  { %154 = vmatpush.msrb.mxu0 %v128_v25 }
  0x82   :  { %v67_v16 = vpop.f32.mrf.mxu1 }
  0x83   :  { %v68_v17 = vadd.f32 %v67_v16, %v23_v15 }
  0x85   :  { %v70_v18 = vmax.f32 %v68_v17, 0.0 }
  0x87   :  { %240 = vmatmul.msk.f32.vlgmr.msra.gmra.mxu2 %vm79_vm1, %v70_v18  ;;  %241 = vmatmul.msk.f32.vlgmr.msra.gmra.mxu3 %vm79_vm1, %v70_v18 }
  0x89   :  { %v47_v38 = vpop.f32.mrf.mxu0 }
  0x8a   :  { %v48_v41 = vadd.f32 %v47_v38, %v22_v39 }
 0x10a   :  { %v120_v29 = vpop.f32.mrf.mxu3  ;;  %v100_v40 = vpop.f32.mrf.mxu2 }
 0x10b   :  { %v126_v30 = vadd.f32 %v246_v28, %v120_v29  ;;  %v123_v43 = vadd.f32 %v100_v40, %v48_v41 }
 0x10d   :  { %v127_v31 = vmax.f32 %v126_v30, 0.0 }
 0x10f   :  { %242 = vmatmul.msk.f32.vlgmr.msrb.gmra.mxu0 %vm79_vm1, %v127_v31  ;;  %243 = vmatmul.msk.f32.vlgmr.msrb.gmra.mxu1 %vm79_vm1, %v127_v31 }
 0x18c   :  { %v176_v35 = vpop.f32.mrf.mxu1  ;;  %v156_v42 = vpop.f32.mrf.mxu0 }
 0x18d   :  { %v182_v36 = vadd.f32 %v247_v34, %v176_v35  ;;  %v179_v44 = vadd.f32 %v156_v42, %v123_v43 }
 0x18f   :  { %v183_v37 = vmax.f32 %v182_v36, 0.0 }
 0x191   :  { %244 = vmatmul.msk.f32.vlgmr.msrb.gmra.mxu2 %vm79_vm1, %v183_v37 }
 0x214   :  { %v208_v45 = vpop.f32.mrf.mxu2 }
 0x215   :  { %v211_v46 = vadd.f32 %v208_v45, %v179_v44 }
 0x217   :  { %248 = vtanh.f32 %v211_v46 }
 0x21d   :  { %v249_v48 = vpop.eup %248 }
 0x21e   :  { %v215_v50 = vadd.f32 1.0, %v249_v48 }
 0x220   :  { %v216_v51 = vmul.f32 3.5, %v215_v50 }
 0x222   :  { %v217_v52 = vadd.f32 -5.0, %v216_v51 }
 0x224   :  { %v219_v53 = vsel %vm218_vm2, %v217_v52, %v211_v46 }
 0x225   :  { %221 = vst.msk [vmem:[#allocation2] sm:$0xff] %vm220_vm3, %v219_v53 }
 0x226   :  { %232 = dma.vmem_to_hbm [thread:$0]  %s228_s2, 128, %s230_s14, [#allocation3]  }
 0x227   :  { %274 = dma.done.wait [#allocation3], 128  }
 0x228   :  { %275 = vsyncadd [#allocation3], 4294967168 }
 0x229   :  { %237 = vsyncpa [#allocation3], 1 }

</bundles_post_ra>
